<compile_context>
chip_gen: v7x
topology: tpu7x:2x2x1
jax: 0.10.0
libtpu: 0.0.40
codegen_flags: <defaults>
</compile_context>

<pallas_src>
import jax
import jax.numpy as jnp
import numpy as np
from jax.experimental import pallas as pl
from jax.experimental.pallas import tpu as pltpu

NEG_SLOPE = 0.2


def _round_up(x, m):
    return (x + m - 1) // m * m


def _leaky_relu(x):
    # slope < 1  =>  leaky_relu(x) == max(x, slope*x)
    return jnp.maximum(x, NEG_SLOPE * x)


# ----------------------------------------------------------------------------- kernel
def film_kernel(feats_ref, resrc_ref,
                w_stem0_ref, w_film0_ref, w_hid_ref, w_film1_ref, w_head_ref, w_out_ref,
                b_hid_ref, b_film_ref, b_out_ref,
                o_ref):
    """feats/resrc/o: (tile_b, *) f32 tiles.  Weights: bf16, whole-array VMEM-resident.
    w_hid: (4, DH, DH) = [stem1, stem2, fc1, fc2].  b_hid: (9, DH) f32 =
    [stem0, stem1, stem2, fc1, fc2, head_g1, head_b1, head_g2, head_b2]."""
    DH = w_hid_ref.shape[-1]

    def mm(x, w):
        # bf16 MXU matmul, f32 accumulation.
        return jnp.dot(x.astype(jnp.bfloat16), w, preferred_element_type=jnp.float32)

    def brow(ref, i):  # (1, width) f32 bias row, static index
        return ref[i:i + 1, :]

    # ---- stem: 3 x (Linear + LeakyReLU) ----
    x = _leaky_relu(mm(feats_ref[...], w_stem0_ref[...]) + brow(b_hid_ref, 0))
    x = _leaky_relu(mm(x, w_hid_ref[0]) + brow(b_hid_ref, 1))
    x = _leaky_relu(mm(x, w_hid_ref[1]) + brow(b_hid_ref, 2))

    # ---- film trunk: 2 x (Linear + LeakyReLU) ----
    h = _leaky_relu(mm(resrc_ref[...], w_film0_ref[...]) + brow(b_film_ref, 0))
    h = _leaky_relu(mm(h, w_film1_ref[...]) + brow(b_film_ref, 1))

    # ---- fused FiLM head: one (DM, 4*DH) matmul, slice at 128-aligned offsets ----
    head = mm(h, w_head_ref[...])
    g1 = head[:, 0 * DH:1 * DH] + brow(b_hid_ref, 5)
    b1 = head[:, 1 * DH:2 * DH] + brow(b_hid_ref, 6)
    g2 = head[:, 2 * DH:3 * DH] + brow(b_hid_ref, 7)
    b2 = head[:, 3 * DH:4 * DH] + brow(b_hid_ref, 8)

    # ---- FiLM modulation (f32) + fc1 / fc2 ----
    x = _leaky_relu(mm(g1 * x + b1, w_hid_ref[2]) + brow(b_hid_ref, 3))
    x = _leaky_relu(mm(g2 * x + b2, w_hid_ref[3]) + brow(b_hid_ref, 4))

    # ---- out_fc (lane-dense padded output) ----
    o_ref[...] = (mm(x, w_out_ref[...]) + b_out_ref[0:1, :]).astype(o_ref.dtype)


# ----------------------------------------------------------------------------- packing (done ONCE)
def pack_params(params):
    """Pad/pack weights (bf16) and biases (f32) once, outside the per-call path."""
    feats_dim, hid = params["s0w"].shape
    resrc_dim, film_dim = params["f0w"].shape
    out_dim = params["outw"].shape[1]

    DH = _round_up(hid, 128)
    DM = _round_up(film_dim, 128)
    DO = _round_up(out_dim, 128)

    def wpad(w, rows, cols):
        buf = jnp.zeros((rows, cols), jnp.float32)
        buf = buf.at[: w.shape[0], : w.shape[1]].set(w.astype(jnp.float32))
        return buf.astype(jnp.bfloat16)

    def bpad(b, cols):
        buf = jnp.zeros((cols,), jnp.float32)
        return buf.at[: b.shape[-1]].set(b.reshape(-1).astype(jnp.float32))

    # FiLM head Linear(film_dim, 4*hid) fused as one (DM, 4*DH) matmul whose
    # column groups are [g1 | b1 | g2 | b2], each padded to a 128-aligned DH slot.
    f2w, f2b = params["f2w"], params["f2b"]
    w_head = jnp.zeros((DM, 4 * DH), jnp.float32)
    head_bias = []
    for c in range(4):
        w_head = w_head.at[:film_dim, c * DH: c * DH + hid].set(
            f2w[:, c * hid:(c + 1) * hid].astype(jnp.float32))
        head_bias.append(bpad(f2b[:, c * hid:(c + 1) * hid], DH))
    w_head = w_head.astype(jnp.bfloat16)

    arrays = dict(
        w_stem0=wpad(params["s0w"], feats_dim, DH),   # true K, padded N
        w_film0=wpad(params["f0w"], resrc_dim, DM),   # true K, padded N
        w_hid=jnp.stack([wpad(params[k], DH, DH) for k in ("s1w", "s2w", "fc1w", "fc2w")]),
        w_film1=wpad(params["f1w"], DM, DM),
        w_head=w_head,
        w_out=wpad(params["outw"], DH, DO),
        b_hid=jnp.stack([bpad(params["s0b"], DH), bpad(params["s1b"], DH),
                         bpad(params["s2b"], DH), bpad(params["fc1b"], DH),
                         bpad(params["fc2b"], DH)] + head_bias),          # (9, DH) f32
        b_film=jnp.stack([bpad(params["f0b"], DM), bpad(params["f1b"], DM)]),  # (2, DM) f32
        b_out=bpad(params["outb"], DO)[None, :],                               # (1, DO) f32
    )
    dims = dict(feats_dim=feats_dim, resrc_dim=resrc_dim, hid=hid,
                film_dim=film_dim, out_dim=out_dim, DH=DH, DM=DM, DO=DO)
    return arrays, dims


# ----------------------------------------------------------------------------- wrapper
def _choose_tile_b(B, requested):
    if B <= 16:
        return B                                  # single full-batch block (== array dim)
    t = max(16, min(requested, (B // 16) * 16))   # multiple of 16, <= B
    # Guarantee >= 2 grid steps when the batch is big enough (v7x dual-TC sharding).
    if pl.cdiv(B, t) < 2 and B >= 32:
        t = _round_up(pl.cdiv(B, 2), 16)
    return t


def film_model(feats, resrc, packed, *, tile_b=512):
    """feats: (B, feats_dim), resrc: (B, resrc_dim), packed = pack_params(params)."""
    arrays, dims = packed
    B = feats.shape[0]
    feats_dim, resrc_dim = dims["feats_dim"], dims["resrc_dim"]
    hid, film_dim, out_dim = dims["hid"], dims["film_dim"], dims["out_dim"]
    DO = dims["DO"]
    assert feats.shape[1] == feats_dim and resrc.shape[1] == resrc_dim

    tile_b = _choose_tile_b(B, tile_b)
    grid = (pl.cdiv(B, tile_b),)

    feats = feats.astype(jnp.float32)
    resrc = resrc.astype(jnp.float32)

    resident = pl.BlockSpec(memory_space=pltpu.MemorySpace.VMEM)  # whole array, single copy
    param_names = ("w_stem0", "w_film0", "w_hid", "w_film1", "w_head", "w_out",
                   "b_hid", "b_film", "b_out")
    param_arrays = [arrays[k] for k in param_names]

    # Explicit VMEM budget: resident params (single-buffered) + double-buffered
    # streamed activation tiles + headroom for in-kernel intermediates.
    param_bytes = sum(int(np.prod(a.shape)) * a.dtype.itemsize for a in param_arrays)
    act_bytes = 2 * tile_b * 4 * (feats_dim + resrc_dim + DO)
    vmem_limit = int(min(48 << 20, max(32 << 20, param_bytes + act_bytes + (8 << 20))))

    # Advisory cost (true, unpadded work).
    flops = 2 * B * (feats_dim * hid + 4 * hid * hid + resrc_dim * film_dim
                     + film_dim * film_dim + film_dim * 4 * hid + hid * out_dim)
    bytes_accessed = param_bytes + 4 * B * (feats_dim + resrc_dim + DO)
    cost = pl.CostEstimate(flops=flops, transcendentals=0, bytes_accessed=bytes_accessed)

    out = pl.pallas_call(
        film_kernel,
        out_shape=jax.ShapeDtypeStruct((B, DO), jnp.float32),
        grid=grid,
        in_specs=[
            pl.BlockSpec((tile_b, feats_dim), lambda i: (i, 0)),   # feats batch tile
            pl.BlockSpec((tile_b, resrc_dim), lambda i: (i, 0)),   # resrc batch tile
        ] + [resident] * len(param_arrays),                        # weights/biases, resident
        out_specs=pl.BlockSpec((tile_b, DO), lambda i: (i, 0)),    # lane-dense output slab
        compiler_params=pltpu.CompilerParams(
            dimension_semantics=("parallel",),                     # shard batch across TCs (v7x)
            vmem_limit_bytes=vmem_limit,
        ),
        cost_estimate=cost,
    )(feats, resrc, *param_arrays)

    return out[:, :out_dim]


# ----------------------------------------------------------------------------- init & ref
def init_linear(key, in_dim, out_dim):
    """PyTorch-style uniform(-1/sqrt(in), 1/sqrt(in)); weight stored as (in, out)."""
    kw, kb = jax.random.split(key)
    bound = 1.0 / np.sqrt(in_dim)
    w = jax.random.uniform(kw, (in_dim, out_dim), jnp.float32, -bound, bound)
    b = jax.random.uniform(kb, (1, out_dim), jnp.float32, -bound, bound)
    return w, b


def init_params(key, feats_dim, resrc_dim, hid_dim, film_dim, out_dim):
    keys = jax.random.split(key, 9)
    p = {}
    p["s0w"], p["s0b"] = init_linear(keys[0], feats_dim, hid_dim)
    p["s1w"], p["s1b"] = init_linear(keys[1], hid_dim, hid_dim)
    p["s2w"], p["s2b"] = init_linear(keys[2], hid_dim, hid_dim)
    p["f0w"], p["f0b"] = init_linear(keys[3], resrc_dim, film_dim)
    p["f1w"], p["f1b"] = init_linear(keys[4], film_dim, film_dim)
    p["f2w"], p["f2b"] = init_linear(keys[5], film_dim, hid_dim * 4)
    p["fc1w"], p["fc1b"] = init_linear(keys[6], hid_dim, hid_dim)
    p["fc2w"], p["fc2b"] = init_linear(keys[7], hid_dim, hid_dim)
    p["outw"], p["outb"] = init_linear(keys[8], hid_dim, out_dim)
    return p


def film_model_ref(feats, resrc, params):
    """Pure-JAX f32 reference for correctness checking."""
    def lin(x, w, b):
        return x @ w + b

    x = _leaky_relu(lin(feats, params["s0w"], params["s0b"]))
    x = _leaky_relu(lin(x, params["s1w"], params["s1b"]))
    x = _leaky_relu(lin(x, params["s2w"], params["s2b"]))
    h = _leaky_relu(lin(resrc, params["f0w"], params["f0b"]))
    h = _leaky_relu(lin(h, params["f1w"], params["f1b"]))
    h = lin(h, params["f2w"], params["f2b"])
    hid = x.shape[-1]
    g1, b1, g2, b2 = (h[:, i * hid:(i + 1) * hid] for i in range(4))
    x = _leaky_relu(lin(g1 * x + b1, params["fc1w"], params["fc1b"]))
    x = _leaky_relu(lin(g2 * x + b2, params["fc2w"], params["fc2b"]))
    return lin(x, params["outw"], params["outb"])


if __name__ == "__main__":
    # Small shapes consistent with the module's forward.
    B, feats_dim, resrc_dim, hid_dim, film_dim, out_dim = 8, 32, 16, 32, 32, 8

    key = jax.random.PRNGKey(0)
    k_feats, k_resrc, k_params = jax.random.split(key, 3)

    feats = jax.random.normal(k_feats, (B, feats_dim), jnp.float32)
    resrc = jax.random.normal(k_resrc, (B, resrc_dim), jnp.float32)
    params = init_params(k_params, feats_dim, resrc_dim, hid_dim, film_dim, out_dim)

    packed = pack_params(params)   # packed once, outside the per-call path

    out = film_model(feats, resrc, packed)
    out = jax.block_until_ready(out)

    ref = film_model_ref(feats, resrc, params)
    # bf16 weights/matmul inputs (f32 accumulation) => loosened tolerance vs f32 reference.
    np.testing.assert_allclose(np.asarray(out), np.asarray(ref), rtol=5e-2, atol=5e-2)

    print("KERNEL_OK")
</pallas_src>

<mosaic_0001>
module attributes {stable_mosaic.version = 11 : i64} {
  func.func @film_kernel(%arg0: i32, %arg1: memref<8x32xf32, #tpu.memory_space<vmem>>, %arg2: memref<8x16xf32, #tpu.memory_space<vmem>>, %arg3: memref<32x128xbf16, #tpu.memory_space<vmem>>, %arg4: memref<16x128xbf16, #tpu.memory_space<vmem>>, %arg5: memref<4x128x128xbf16, #tpu.memory_space<vmem>>, %arg6: memref<128x128xbf16, #tpu.memory_space<vmem>>, %arg7: memref<128x512xbf16, #tpu.memory_space<vmem>>, %arg8: memref<128x128xbf16, #tpu.memory_space<vmem>>, %arg9: memref<9x128xf32, #tpu.memory_space<vmem>>, %arg10: memref<2x128xf32, #tpu.memory_space<vmem>>, %arg11: memref<1x128xf32, #tpu.memory_space<vmem>>, %arg12: memref<8x128xf32, #tpu.memory_space<vmem>>) attributes {dimension_semantics = [#tpu.dimension_semantics<parallel>], iteration_bounds = array<i64: 1>, scalar_prefetch = 0 : i64, scratch_operands = 0 : i64, tpu.core_type = #tpu.core_type<tc>, window_params = [{transform_indices = @transform_0, window_bounds = array<i64: 8, 32>}, {transform_indices = @transform_1, window_bounds = array<i64: 8, 16>}, {pipeline_mode = #tpu.pipeline_mode<synchronous>, transform_indices = @transform_2, window_bounds = array<i64: 32, 128>}, {pipeline_mode = #tpu.pipeline_mode<synchronous>, transform_indices = @transform_3, window_bounds = array<i64: 16, 128>}, {pipeline_mode = #tpu.pipeline_mode<synchronous>, transform_indices = @transform_4, window_bounds = array<i64: 4, 128, 128>}, {pipeline_mode = #tpu.pipeline_mode<synchronous>, transform_indices = @transform_5, window_bounds = array<i64: 128, 128>}, {pipeline_mode = #tpu.pipeline_mode<synchronous>, transform_indices = @transform_6, window_bounds = array<i64: 128, 512>}, {pipeline_mode = #tpu.pipeline_mode<synchronous>, transform_indices = @transform_7, window_bounds = array<i64: 128, 128>}, {pipeline_mode = #tpu.pipeline_mode<synchronous>, transform_indices = @transform_8, window_bounds = array<i64: 9, 128>}, {pipeline_mode = #tpu.pipeline_mode<synchronous>, transform_indices = @transform_9, window_bounds = array<i64: 2, 128>}, {pipeline_mode = #tpu.pipeline_mode<synchronous>, transform_indices = @transform_10, window_bounds = array<i64: 1, 128>}, {transform_indices = @transform_11, window_bounds = array<i64: 8, 128>}]} {
    %c0 = arith.constant 0 : index
    %c0_0 = arith.constant 0 : index
    %0 = vector.load %arg1[%c0, %c0_0] : memref<8x32xf32, #tpu.memory_space<vmem>>, vector<8x32xf32>
    %c0_1 = arith.constant 0 : index
    %c0_2 = arith.constant 0 : index
    %1 = vector.load %arg3[%c0_1, %c0_2] : memref<32x128xbf16, #tpu.memory_space<vmem>>, vector<32x128xbf16>
    %2 = arith.truncf %0 : vector<8x32xf32> to vector<8x32xbf16>
    %cst = arith.constant dense<0.000000e+00> : vector<8x128xf32>
    %3 = tpu.matmul %2, %1, %cst {dimension_numbers = #tpu.dot_dimension_numbers<[1], [0], [0], [1], [0, 0, 1, 1], [], []>} : vector<8x32xbf16>, vector<32x128xbf16>, vector<8x128xf32> -> vector<8x128xf32>
    %c0_3 = arith.constant 0 : index
    %c0_4 = arith.constant 0 : index
    %4 = vector.load %arg9[%c0_3, %c0_4] : memref<9x128xf32, #tpu.memory_space<vmem>>, vector<1x128xf32>
    %5 = vector.broadcast %4 : vector<1x128xf32> to vector<8x128xf32>
    %6 = arith.addf %3, %5 : vector<8x128xf32>
    %cst_5 = arith.constant 2.000000e-01 : f32
    %7 = vector.broadcast %cst_5 : f32 to vector<8x128xf32>
    %8 = arith.mulf %7, %6 : vector<8x128xf32>
    %9 = arith.maximumf %6, %8 : vector<8x128xf32>
    %c0_6 = arith.constant 0 : index
    %c0_7 = arith.constant 0 : index
    %c0_8 = arith.constant 0 : index
    %10 = vector.load %arg5[%c0_6, %c0_7, %c0_8] : memref<4x128x128xbf16, #tpu.memory_space<vmem>>, vector<1x128x128xbf16>
    %11 = vector.shape_cast %10 : vector<1x128x128xbf16> to vector<128x128xbf16>
    %12 = arith.truncf %9 : vector<8x128xf32> to vector<8x128xbf16>
    %cst_9 = arith.constant dense<0.000000e+00> : vector<8x128xf32>
    %13 = tpu.matmul %12, %11, %cst_9 {dimension_numbers = #tpu.dot_dimension_numbers<[1], [0], [0], [1], [0, 0, 1, 1], [], []>} : vector<8x128xbf16>, vector<128x128xbf16>, vector<8x128xf32> -> vector<8x128xf32>
    %c1 = arith.constant 1 : index
    %c0_10 = arith.constant 0 : index
    %14 = vector.load %arg9[%c1, %c0_10] : memref<9x128xf32, #tpu.memory_space<vmem>>, vector<1x128xf32>
    %15 = vector.broadcast %14 : vector<1x128xf32> to vector<8x128xf32>
    %16 = arith.addf %13, %15 : vector<8x128xf32>
    %cst_11 = arith.constant 2.000000e-01 : f32
    %17 = vector.broadcast %cst_11 : f32 to vector<8x128xf32>
    %18 = arith.mulf %17, %16 : vector<8x128xf32>
    %19 = arith.maximumf %16, %18 : vector<8x128xf32>
    %c1_12 = arith.constant 1 : index
    %c0_13 = arith.constant 0 : index
    %c0_14 = arith.constant 0 : index
    %20 = vector.load %arg5[%c1_12, %c0_13, %c0_14] : memref<4x128x128xbf16, #tpu.memory_space<vmem>>, vector<1x128x128xbf16>
    %21 = vector.shape_cast %20 : vector<1x128x128xbf16> to vector<128x128xbf16>
    %22 = arith.truncf %19 : vector<8x128xf32> to vector<8x128xbf16>
    %cst_15 = arith.constant dense<0.000000e+00> : vector<8x128xf32>
    %23 = tpu.matmul %22, %21, %cst_15 {dimension_numbers = #tpu.dot_dimension_numbers<[1], [0], [0], [1], [0, 0, 1, 1], [], []>} : vector<8x128xbf16>, vector<128x128xbf16>, vector<8x128xf32> -> vector<8x128xf32>
    %c2 = arith.constant 2 : index
    %c0_16 = arith.constant 0 : index
    %24 = vector.load %arg9[%c2, %c0_16] : memref<9x128xf32, #tpu.memory_space<vmem>>, vector<1x128xf32>
    %25 = vector.broadcast %24 : vector<1x128xf32> to vector<8x128xf32>
    %26 = arith.addf %23, %25 : vector<8x128xf32>
    %cst_17 = arith.constant 2.000000e-01 : f32
    %27 = vector.broadcast %cst_17 : f32 to vector<8x128xf32>
    %28 = arith.mulf %27, %26 : vector<8x128xf32>
    %29 = arith.maximumf %26, %28 : vector<8x128xf32>
    %c0_18 = arith.constant 0 : index
    %c0_19 = arith.constant 0 : index
    %30 = vector.load %arg2[%c0_18, %c0_19] : memref<8x16xf32, #tpu.memory_space<vmem>>, vector<8x16xf32>
    %c0_20 = arith.constant 0 : index
    %c0_21 = arith.constant 0 : index
    %31 = vector.load %arg4[%c0_20, %c0_21] : memref<16x128xbf16, #tpu.memory_space<vmem>>, vector<16x128xbf16>
    %32 = arith.truncf %30 : vector<8x16xf32> to vector<8x16xbf16>
    %cst_22 = arith.constant dense<0.000000e+00> : vector<8x128xf32>
    %33 = tpu.matmul %32, %31, %cst_22 {dimension_numbers = #tpu.dot_dimension_numbers<[1], [0], [0], [1], [0, 0, 1, 1], [], []>} : vector<8x16xbf16>, vector<16x128xbf16>, vector<8x128xf32> -> vector<8x128xf32>
    %c0_23 = arith.constant 0 : index
    %c0_24 = arith.constant 0 : index
    %34 = vector.load %arg10[%c0_23, %c0_24] : memref<2x128xf32, #tpu.memory_space<vmem>>, vector<1x128xf32>
    %35 = vector.broadcast %34 : vector<1x128xf32> to vector<8x128xf32>
    %36 = arith.addf %33, %35 : vector<8x128xf32>
    %cst_25 = arith.constant 2.000000e-01 : f32
    %37 = vector.broadcast %cst_25 : f32 to vector<8x128xf32>
    %38 = arith.mulf %37, %36 : vector<8x128xf32>
    %39 = arith.maximumf %36, %38 : vector<8x128xf32>
    %c0_26 = arith.constant 0 : index
    %c0_27 = arith.constant 0 : index
    %40 = vector.load %arg6[%c0_26, %c0_27] : memref<128x128xbf16, #tpu.memory_space<vmem>>, vector<128x128xbf16>
    %41 = arith.truncf %39 : vector<8x128xf32> to vector<8x128xbf16>
    %cst_28 = arith.constant dense<0.000000e+00> : vector<8x128xf32>
    %42 = tpu.matmul %41, %40, %cst_28 {dimension_numbers = #tpu.dot_dimension_numbers<[1], [0], [0], [1], [0, 0, 1, 1], [], []>} : vector<8x128xbf16>, vector<128x128xbf16>, vector<8x128xf32> -> vector<8x128xf32>
    %c1_29 = arith.constant 1 : index
    %c0_30 = arith.constant 0 : index
    %43 = vector.load %arg10[%c1_29, %c0_30] : memref<2x128xf32, #tpu.memory_space<vmem>>, vector<1x128xf32>
    %44 = vector.broadcast %43 : vector<1x128xf32> to vector<8x128xf32>
    %45 = arith.addf %42, %44 : vector<8x128xf32>
    %cst_31 = arith.constant 2.000000e-01 : f32
    %46 = vector.broadcast %cst_31 : f32 to vector<8x128xf32>
    %47 = arith.mulf %46, %45 : vector<8x128xf32>
    %48 = arith.maximumf %45, %47 : vector<8x128xf32>
    %c0_32 = arith.constant 0 : index
    %c0_33 = arith.constant 0 : index
    %49 = vector.load %arg7[%c0_32, %c0_33] : memref<128x512xbf16, #tpu.memory_space<vmem>>, vector<128x512xbf16>
    %50 = arith.truncf %48 : vector<8x128xf32> to vector<8x128xbf16>
    %cst_34 = arith.constant dense<0.000000e+00> : vector<8x512xf32>
    %51 = tpu.matmul %50, %49, %cst_34 {dimension_numbers = #tpu.dot_dimension_numbers<[1], [0], [0], [1], [0, 0, 1, 1], [], []>} : vector<8x128xbf16>, vector<128x512xbf16>, vector<8x512xf32> -> vector<8x512xf32>
    %52 = vector.extract_strided_slice %51 {offsets = [0, 0], sizes = [8, 128], strides = [1, 1]} : vector<8x512xf32> to vector<8x128xf32>
    %c5 = arith.constant 5 : index
    %c0_35 = arith.constant 0 : index
    %53 = vector.load %arg9[%c5, %c0_35] : memref<9x128xf32, #tpu.memory_space<vmem>>, vector<1x128xf32>
    %54 = vector.broadcast %53 : vector<1x128xf32> to vector<8x128xf32>
    %55 = arith.addf %52, %54 : vector<8x128xf32>
    %56 = vector.extract_strided_slice %51 {offsets = [0, 128], sizes = [8, 128], strides = [1, 1]} : vector<8x512xf32> to vector<8x128xf32>
    %c6 = arith.constant 6 : index
    %c0_36 = arith.constant 0 : index
    %57 = vector.load %arg9[%c6, %c0_36] : memref<9x128xf32, #tpu.memory_space<vmem>>, vector<1x128xf32>
    %58 = vector.broadcast %57 : vector<1x128xf32> to vector<8x128xf32>
    %59 = arith.addf %56, %58 : vector<8x128xf32>
    %60 = vector.extract_strided_slice %51 {offsets = [0, 256], sizes = [8, 128], strides = [1, 1]} : vector<8x512xf32> to vector<8x128xf32>
    %c7 = arith.constant 7 : index
    %c0_37 = arith.constant 0 : index
    %61 = vector.load %arg9[%c7, %c0_37] : memref<9x128xf32, #tpu.memory_space<vmem>>, vector<1x128xf32>
    %62 = vector.broadcast %61 : vector<1x128xf32> to vector<8x128xf32>
    %63 = arith.addf %60, %62 : vector<8x128xf32>
    %64 = vector.extract_strided_slice %51 {offsets = [0, 384], sizes = [8, 128], strides = [1, 1]} : vector<8x512xf32> to vector<8x128xf32>
    %c8 = arith.constant 8 : index
    %c0_38 = arith.constant 0 : index
    %65 = vector.load %arg9[%c8, %c0_38] : memref<9x128xf32, #tpu.memory_space<vmem>>, vector<1x128xf32>
    %66 = vector.broadcast %65 : vector<1x128xf32> to vector<8x128xf32>
    %67 = arith.addf %64, %66 : vector<8x128xf32>
    %68 = arith.mulf %55, %29 : vector<8x128xf32>
    %69 = arith.addf %68, %59 : vector<8x128xf32>
    %c2_39 = arith.constant 2 : index
    %c0_40 = arith.constant 0 : index
    %c0_41 = arith.constant 0 : index
    %70 = vector.load %arg5[%c2_39, %c0_40, %c0_41] : memref<4x128x128xbf16, #tpu.memory_space<vmem>>, vector<1x128x128xbf16>
    %71 = vector.shape_cast %70 : vector<1x128x128xbf16> to vector<128x128xbf16>
    %72 = arith.truncf %69 : vector<8x128xf32> to vector<8x128xbf16>
    %cst_42 = arith.constant dense<0.000000e+00> : vector<8x128xf32>
    %73 = tpu.matmul %72, %71, %cst_42 {dimension_numbers = #tpu.dot_dimension_numbers<[1], [0], [0], [1], [0, 0, 1, 1], [], []>} : vector<8x128xbf16>, vector<128x128xbf16>, vector<8x128xf32> -> vector<8x128xf32>
    %c3 = arith.constant 3 : index
    %c0_43 = arith.constant 0 : index
    %74 = vector.load %arg9[%c3, %c0_43] : memref<9x128xf32, #tpu.memory_space<vmem>>, vector<1x128xf32>
    %75 = vector.broadcast %74 : vector<1x128xf32> to vector<8x128xf32>
    %76 = arith.addf %73, %75 : vector<8x128xf32>
    %cst_44 = arith.constant 2.000000e-01 : f32
    %77 = vector.broadcast %cst_44 : f32 to vector<8x128xf32>
    %78 = arith.mulf %77, %76 : vector<8x128xf32>
    %79 = arith.maximumf %76, %78 : vector<8x128xf32>
    %80 = arith.mulf %63, %79 : vector<8x128xf32>
    %81 = arith.addf %80, %67 : vector<8x128xf32>
    %c3_45 = arith.constant 3 : index
    %c0_46 = arith.constant 0 : index
    %c0_47 = arith.constant 0 : index
    %82 = vector.load %arg5[%c3_45, %c0_46, %c0_47] : memref<4x128x128xbf16, #tpu.memory_space<vmem>>, vector<1x128x128xbf16>
    %83 = vector.shape_cast %82 : vector<1x128x128xbf16> to vector<128x128xbf16>
    %84 = arith.truncf %81 : vector<8x128xf32> to vector<8x128xbf16>
    %cst_48 = arith.constant dense<0.000000e+00> : vector<8x128xf32>
    %85 = tpu.matmul %84, %83, %cst_48 {dimension_numbers = #tpu.dot_dimension_numbers<[1], [0], [0], [1], [0, 0, 1, 1], [], []>} : vector<8x128xbf16>, vector<128x128xbf16>, vector<8x128xf32> -> vector<8x128xf32>
    %c4 = arith.constant 4 : index
    %c0_49 = arith.constant 0 : index
    %86 = vector.load %arg9[%c4, %c0_49] : memref<9x128xf32, #tpu.memory_space<vmem>>, vector<1x128xf32>
    %87 = vector.broadcast %86 : vector<1x128xf32> to vector<8x128xf32>
    %88 = arith.addf %85, %87 : vector<8x128xf32>
    %cst_50 = arith.constant 2.000000e-01 : f32
    %89 = vector.broadcast %cst_50 : f32 to vector<8x128xf32>
    %90 = arith.mulf %89, %88 : vector<8x128xf32>
    %91 = arith.maximumf %88, %90 : vector<8x128xf32>
    %c0_51 = arith.constant 0 : index
    %c0_52 = arith.constant 0 : index
    %92 = vector.load %arg8[%c0_51, %c0_52] : memref<128x128xbf16, #tpu.memory_space<vmem>>, vector<128x128xbf16>
    %93 = arith.truncf %91 : vector<8x128xf32> to vector<8x128xbf16>
    %cst_53 = arith.constant dense<0.000000e+00> : vector<8x128xf32>
    %94 = tpu.matmul %93, %92, %cst_53 {dimension_numbers = #tpu.dot_dimension_numbers<[1], [0], [0], [1], [0, 0, 1, 1], [], []>} : vector<8x128xbf16>, vector<128x128xbf16>, vector<8x128xf32> -> vector<8x128xf32>
    %c0_54 = arith.constant 0 : index
    %c0_55 = arith.constant 0 : index
    %95 = vector.load %arg11[%c0_54, %c0_55] : memref<1x128xf32, #tpu.memory_space<vmem>>, vector<1x128xf32>
    %96 = vector.broadcast %95 : vector<1x128xf32> to vector<8x128xf32>
    %97 = arith.addf %94, %96 : vector<8x128xf32>
    %c0_56 = arith.constant 0 : index
    %c0_57 = arith.constant 0 : index
    %98 = vector.load %arg12[%c0_56, %c0_57] : memref<8x128xf32, #tpu.memory_space<vmem>>, vector<8x128xf32>
    tpu.vector_store %arg12[%c0_56, %c0_57], %97 {strides = array<i32>} : memref<8x128xf32, #tpu.memory_space<vmem>>, vector<8x128xf32>,
    return
  }
  func.func @transform_0(%arg0: i32) -> (i32, i32) {
    %c0_i32 = arith.constant 0 : i32
    %c0_i32_0 = arith.constant 0 : i32
    return %arg0, %c0_i32 : i32, i32
  }
  func.func @transform_1(%arg0: i32) -> (i32, i32) {
    %c0_i32 = arith.constant 0 : i32
    %c0_i32_0 = arith.constant 0 : i32
    return %arg0, %c0_i32 : i32, i32
  }
  func.func @transform_2(%arg0: i32) -> (i32, i32) {
    %c0_i32 = arith.constant 0 : i32
    %c0_i32_0 = arith.constant 0 : i32
    %c0_i32_1 = arith.constant 0 : i32
    return %c0_i32, %c0_i32_0 : i32, i32
  }
  func.func @transform_3(%arg0: i32) -> (i32, i32) {
    %c0_i32 = arith.constant 0 : i32
    %c0_i32_0 = arith.constant 0 : i32
    %c0_i32_1 = arith.constant 0 : i32
    return %c0_i32, %c0_i32_0 : i32, i32
  }
  func.func @transform_4(%arg0: i32) -> (i32, i32, i32) {
    %c0_i32 = arith.constant 0 : i32
    %c0_i32_0 = arith.constant 0 : i32
    %c0_i32_1 = arith.constant 0 : i32
    %c0_i32_2 = arith.constant 0 : i32
    return %c0_i32, %c0_i32_0, %c0_i32_1 : i32, i32, i32
  }
  func.func @transform_5(%arg0: i32) -> (i32, i32) {
    %c0_i32 = arith.constant 0 : i32
    %c0_i32_0 = arith.constant 0 : i32
    %c0_i32_1 = arith.constant 0 : i32
    return %c0_i32, %c0_i32_0 : i32, i32
  }
  func.func @transform_6(%arg0: i32) -> (i32, i32) {
    %c0_i32 = arith.constant 0 : i32
    %c0_i32_0 = arith.constant 0 : i32
    %c0_i32_1 = arith.constant 0 : i32
    return %c0_i32, %c0_i32_0 : i32, i32
  }
  func.func @transform_7(%arg0: i32) -> (i32, i32) {
    %c0_i32 = arith.constant 0 : i32
    %c0_i32_0 = arith.constant 0 : i32
    %c0_i32_1 = arith.constant 0 : i32
    return %c0_i32, %c0_i32_0 : i32, i32
  }
  func.func @transform_8(%arg0: i32) -> (i32, i32) {
    %c0_i32 = arith.constant 0 : i32
    %c0_i32_0 = arith.constant 0 : i32
    %c0_i32_1 = arith.constant 0 : i32
    return %c0_i32, %c0_i32_0 : i32, i32
  }
  func.func @transform_9(%arg0: i32) -> (i32, i32) {
    %c0_i32 = arith.constant 0 : i32
    %c0_i32_0 = arith.constant 0 : i32
    %c0_i32_1 = arith.constant 0 : i32
    return %c0_i32, %c0_i32_0 : i32, i32
  }
  func.func @transform_10(%arg0: i32) -> (i32, i32) {
    %c0_i32 = arith.constant 0 : i32
    %c0_i32_0 = arith.constant 0 : i32
    %c0_i32_1 = arith.constant 0 : i32
    return %c0_i32, %c0_i32_0 : i32, i32
  }
  func.func @transform_11(%arg0: i32) -> (i32, i32) {
    %c0_i32 = arith.constant 0 : i32
    %c0_i32_0 = arith.constant 0 : i32
    return %arg0, %c0_i32 : i32, i32
  }
}

</mosaic_0001>

<bundles_post_ra>
// kernel: tpu_custom_call.1
= control target key start
LH: loop header
LB: loop body
LE: loop exit
PB: predicated region body
PF: predicated region fallthrough
CT: control target
= control target key end

     0   :  { %16 = vsyncpa [#allocation3], 0  ;;  %s2137_s0 = inlined_call_operand.hbm [shape: f32[8,32], index: 0, kind: input, shape index: {}]   ;;  %s2138_s1 = inlined_call_operand.hbm [shape: f32[8,16], index: 1, kind: input, shape index: {}]   ;;  %s2139_s2 = inlined_call_operand.hbm [shape: bf16[32,128], index: 2, kind: input, shape index: {}]   ;;  %s2140_s3 = inlined_call_operand.vmem [shape: bf16[16,128], index: 3, kind: input, shape index: {}]   ;;  %s2141_s4 = inlined_call_operand.hbm [shape: bf16[4,128,128], index: 4, kind: input, shape index: {}]   ;;  %s2142_s5 = inlined_call_operand.hbm [shape: bf16[128,128], index: 5, kind: input, shape index: {}]   ;;  %s2143_s6 = inlined_call_operand.hbm [shape: bf16[128,512], index: 6, kind: input, shape index: {}]   ;;  %s2144_s7 = inlined_call_operand.hbm [shape: bf16[128,128], index: 7, kind: input, shape index: {}]   ;;  %s2145_s8 = inlined_call_operand.vmem [shape: f32[9,128], index: 8, kind: input, shape index: {}]   ;;  %s2146_s9 = inlined_call_operand.vmem [shape: f32[2,128], index: 9, kind: input, shape index: {}]   ;;  %s2147_s10 = inlined_call_operand.vmem [shape: f32[1,128], index: 10, kind: input, shape index: {}]   ;;  %s2148_s11 = inlined_call_operand.hbm [shape: f32[8,128], index: 11, kind: output, shape index: {}]  }
   0x1   :  { %17 = vsyncpa [#allocation6], 0 }
   0x2   :  { %18 = vsyncpa [#allocation9], 0 }
   0x3   :  { %19 = vsyncpa [#allocation12], 0 }
   0x4   :  { %20 = vsyncpa [#allocation4], 0  ;;  %s1848_s17 = smov [#allocation5]   ;;  %s1662_s21 = scalar_lea.hbm %s2138_s1, 128 }
   0x5   :  { %s37_s18 = sshll.u32 %s1848_s17, 4  ;;  %p1663_p0 = scmp.ne.s32.totalorder %s2138_s1, %s1662_s21  ;;  %s38_s18 = int_to_ptr.vmem [resolvable:$true] %s37_s18 }
   0x6   :  { %p1666_p1 = scmp.lt.u32.totalorder %s1662_s21, %s2138_s1 }
   0x8   :  { %p1668_p2 = pnand %p1666_p1, %p1663_p0 }
   0xa   :  { %1671 = shalt.err (!%p1668_p2)
}
   0xb   :  { %s1672_s26 = scalar_lea.vmem %s38_s18, 128  ;;  %p1677_p4 = scmp.lt.s32.totalorder %s38_s18, %s38_s18 }
   0xc   :  { %p1673_p3 = scmp.ne.s32.totalorder %s38_s18, %s1672_s26  ;;  %p1678_p5 = scmp.lt.s32.totalorder %s1672_s26, %s1672_s26 }
   0xe   :  { %p1679_p6 = por %p1678_p5, %p1677_p4 }
  0x10   :  { %p1680_p7 = pnand %p1679_p6, %p1673_p3 }
  0x12   :  { %1683 = shalt.err (!%p1680_p7)
}
  0x13   :  { %40 = dma.hbm_to_vmem [thread:$0]  %s2138_s1, 128, %s38_s18, [#allocation6]  }
  0x14   :  { %s1849_s29 = smov [#allocation8]   ;;  %s1850_s12 = smov [#allocation11]  }
  0x15   :  { %s60_s30 = sshll.u32 %s1849_s29, 4  ;;  %s84_s13 = sshll.u32 %s1850_s12, 4  ;;  %s61_s30 = int_to_ptr.vmem [resolvable:$true] %s60_s30  ;;  %s85_s13 = int_to_ptr.vmem [resolvable:$true] %s84_s13 }
  0x16   :  { %s1684_s16 = scalar_lea.hbm %s2141_s4, 4096 }
  0x17   :  { %p1685_p8 = scmp.ne.s32.totalorder %s2141_s4, %s1684_s16  ;;  %p1688_p9 = scmp.lt.u32.totalorder %s1684_s16, %s2141_s4 }
  0x19   :  { %p1690_p10 = pnand %p1688_p9, %p1685_p8 }
  0x1b   :  { %1693 = shalt.err (!%p1690_p10)
}
  0x1c   :  { %s1694_s1 = scalar_lea.vmem %s61_s30, 4096  ;;  %p1699_p12 = scmp.lt.s32.totalorder %s61_s30, %s61_s30 }
  0x1d   :  { %p1695_p11 = scmp.ne.s32.totalorder %s61_s30, %s1694_s1  ;;  %p1700_p13 = scmp.lt.s32.totalorder %s1694_s1, %s1694_s1 }
  0x1f   :  { %p1701_p0 = por %p1700_p13, %p1699_p12 }
  0x21   :  { %p1702_p1 = pnand %p1701_p0, %p1695_p11 }
  0x23   :  { %1705 = shalt.err (!%p1702_p1)
}
  0x24   :  { %s1851_s18 = smov 64   ;;  %s1852_s22 = smov 4  }
  0x25   :  { %66 = dma.hbm_to_vmem [thread:$0]  %s2141_s4, 4096, %s61_s30, [#allocation9], %s1851_s18, %s1851_s18, %s1852_s22  }
  0x26   :  { %s1706_s27 = scalar_lea.hbm %s2143_s6, 4096 }
  0x27   :  { %p1707_p2 = scmp.ne.s32.totalorder %s2143_s6, %s1706_s27  ;;  %p1710_p3 = scmp.lt.u32.totalorder %s1706_s27, %s2143_s6 }
  0x29   :  { %p1712_p4 = pnand %p1710_p3, %p1707_p2 }
  0x2b   :  { %1715 = shalt.err (!%p1712_p4)
}
  0x2c   :  { %s1716_s15 = scalar_lea.vmem %s85_s13, 4096  ;;  %p1721_p6 = scmp.lt.s32.totalorder %s85_s13, %s85_s13 }
  0x2d   :  { %p1717_p5 = scmp.ne.s32.totalorder %s85_s13, %s1716_s15  ;;  %p1722_p7 = scmp.lt.s32.totalorder %s1716_s15, %s1716_s15 }
  0x2f   :  { %p1723_p8 = por %p1722_p7, %p1721_p6 }
  0x31   :  { %p1724_p9 = pnand %p1723_p8, %p1717_p5 }
  0x33   :  { %1727 = shalt.err (!%p1724_p9)
}
  0x34   :  { %s1853_s4 = smov 256   ;;  %s1854_s30 = smov 16  }
  0x35   :  { %90 = dma.hbm_to_vmem [thread:$0]  %s2143_s6, 4096, %s85_s13, [#allocation12], %s1853_s4, %s1853_s4, %s1854_s30  }
  0x36   :  { %s1855_s19 = smov [#allocation2]   ;;  %s1856_s21 = smov [#allocation7]  }
  0x37   :  { %s27_s20 = sshll.u32 %s1855_s19, 4  ;;  %s46_s1 = sshll.u32 %s1856_s21, 4  ;;  %s28_s20 = int_to_ptr.vmem [resolvable:$true] %s27_s20  ;;  %s47_s1 = int_to_ptr.vmem [resolvable:$true] %s46_s1 }
  0x38   :  { %s1728_s25 = scalar_lea.hbm %s2137_s0, 128 }
  0x39   :  { %p1729_p10 = scmp.ne.s32.totalorder %s2137_s0, %s1728_s25  ;;  %p1732_p11 = scmp.lt.u32.totalorder %s1728_s25, %s2137_s0 }
  0x3b   :  { %p1734_p12 = pnand %p1732_p11, %p1729_p10 }
  0x3d   :  { %1737 = shalt.err (!%p1734_p12)
}
  0x3e   :  { %s1738_s6 = scalar_lea.vmem %s28_s20, 128  ;;  %p1743_p0 = scmp.lt.s32.totalorder %s28_s20, %s28_s20 }
  0x3f   :  { %p1739_p13 = scmp.ne.s32.totalorder %s28_s20, %s1738_s6  ;;  %p1744_p1 = scmp.lt.s32.totalorder %s1738_s6, %s1738_s6 }
  0x41   :  { %p1745_p2 = por %p1744_p1, %p1743_p0 }
  0x43   :  { %p1746_p3 = pnand %p1745_p2, %p1739_p13 }
  0x45   :  { %1749 = shalt.err (!%p1746_p3)
}
  0x46   :  { %30 = dma.hbm_to_vmem [thread:$0]  %s2137_s0, 128, %s28_s20, [#allocation3]  }
  0x47   :  { %s1750_s4 = scalar_lea.hbm %s2139_s2, 256 }
  0x48   :  { %p1751_p4 = scmp.ne.s32.totalorder %s2139_s2, %s1750_s4  ;;  %p1754_p5 = scmp.lt.u32.totalorder %s1750_s4, %s2139_s2 }
  0x4a   :  { %p1756_p6 = pnand %p1754_p5, %p1751_p4 }
  0x4c   :  { %1759 = shalt.err (!%p1756_p6)
}
  0x4d   :  { %s1760_s21 = scalar_lea.vmem %s47_s1, 256  ;;  %p1765_p8 = scmp.lt.s32.totalorder %s47_s1, %s47_s1 }
  0x4e   :  { %p1761_p7 = scmp.ne.s32.totalorder %s47_s1, %s1760_s21  ;;  %p1766_p9 = scmp.lt.s32.totalorder %s1760_s21, %s1760_s21 }
  0x50   :  { %p1767_p10 = por %p1766_p9, %p1765_p8 }
  0x52   :  { %p1768_p11 = pnand %p1767_p10, %p1761_p7 }
  0x54   :  { %1771 = shalt.err (!%p1768_p11)
}
  0x55   :  { %52 = dma.hbm_to_vmem [thread:$0]  %s2139_s2, 256, %s47_s1, [#allocation6], %s1851_s18, %s1851_s18, %s1852_s22  }
  0x56   :  { %s1857_s23 = smov [#allocation10]   ;;  %s1858_s25 = smov [#allocation13]  }
  0x57   :  { %s72_s24 = sshll.u32 %s1857_s23, 4  ;;  %s96_s26 = sshll.u32 %s1858_s25, 4  ;;  %s73_s24 = int_to_ptr.vmem [resolvable:$true] %s72_s24  ;;  %s97_s26 = int_to_ptr.vmem [resolvable:$true] %s96_s26 }
  0x58   :  { %s1772_s29 = scalar_lea.hbm %s2142_s5, 1024 }
  0x59   :  { %p1773_p12 = scmp.ne.s32.totalorder %s2142_s5, %s1772_s29  ;;  %p1776_p13 = scmp.lt.u32.totalorder %s1772_s29, %s2142_s5 }
  0x5b   :  { %p1778_p0 = pnand %p1776_p13, %p1773_p12 }
  0x5d   :  { %1781 = shalt.err (!%p1778_p0)
}
  0x5e   :  { %s1782_s2 = scalar_lea.vmem %s73_s24, 1024  ;;  %p1787_p2 = scmp.lt.s32.totalorder %s73_s24, %s73_s24 }
  0x5f   :  { %p1783_p1 = scmp.ne.s32.totalorder %s73_s24, %s1782_s2  ;;  %p1788_p3 = scmp.lt.s32.totalorder %s1782_s2, %s1782_s2 }
  0x61   :  { %p1789_p4 = por %p1788_p3, %p1787_p2 }
  0x63   :  { %p1790_p5 = pnand %p1789_p4, %p1783_p1 }
  0x65   :  { %1793 = shalt.err (!%p1790_p5)
}
  0x66   :  { %78 = dma.hbm_to_vmem [thread:$0]  %s2142_s5, 1024, %s73_s24, [#allocation9], %s1851_s18, %s1851_s18, %s1852_s22  }
  0x67   :  { %s1794_s16 = scalar_lea.hbm %s2144_s7, 1024 }
  0x68   :  { %p1795_p6 = scmp.ne.s32.totalorder %s2144_s7, %s1794_s16  ;;  %p1798_p7 = scmp.lt.u32.totalorder %s1794_s16, %s2144_s7 }
  0x6a   :  { %p1800_p8 = pnand %p1798_p7, %p1795_p6 }
  0x6c   :  { %1803 = shalt.err (!%p1800_p8)
}
  0x6d   :  { %s1804_s20 = scalar_lea.vmem %s97_s26, 1024  ;;  %p1809_p10 = scmp.lt.s32.totalorder %s97_s26, %s97_s26 }
  0x6e   :  { %p1805_p9 = scmp.ne.s32.totalorder %s97_s26, %s1804_s20  ;;  %p1810_p11 = scmp.lt.s32.totalorder %s1804_s20, %s1804_s20 }
  0x70   :  { %p1811_p12 = por %p1810_p11, %p1809_p10 }
  0x72   :  { %p1812_p13 = pnand %p1811_p12, %p1805_p9 }
  0x74   :  { %1815 = shalt.err (!%p1812_p13)
}
  0x75   :  { %102 = dma.hbm_to_vmem [thread:$0]  %s2144_s7, 1024, %s97_s26, [#allocation12], %s1851_s18, %s1851_s18, %s1852_s22  }
  0x76   :  { %1838 = dma.done.wait [#allocation3], 128  }
  0x77   :  { %1839 = vsyncadd [#allocation3], 4294967168 }
  0x78   :  { %1840 = dma.done.wait [#allocation6], 384  }
  0x79   :  { %1841 = vsyncadd [#allocation6], 4294966912 }
  0x7a   :  { %1842 = dma.done.wait [#allocation9], 5120  }
  0x7b   :  { %1843 = vsyncadd [#allocation9], 4294962176 }
  0x7c   :  { %1844 = dma.done.wait [#allocation12], 5120  }
  0x7d   :  { %1845 = vsyncadd [#allocation12], 4294962176  ;;  %v1859_v0 = vmov 0.0   ;;  %vm1860_vm0 = vmmov 0   ;;  %v1563_v1 = vld [vmem:[#allocation7] sm:$0xff]   ;;  %v1564_v2 = vld [vmem:[#allocation7 + $0x8] sm:$0xff]  }
  0x7e   :  { %1414 = vmatprep.subr.bf16.mxu0 %v1859_v0  ;;  %1418 = vmatprep.mubr.msk.bf16.mxu0 %vm1860_vm0, %v1859_v0  ;;  %v131_v3 = vld [vmem:[#allocation2] sm:$0xff]  ;;  %v1566_v6 = vld [vmem:[#allocation8 + $0x8] sm:$0xff]   ;;  %vm154_vm1 = vcmask 261120   ;;  %v1567_v7 = vld [vmem:[#allocation8 + $0x10] sm:$0xff]   ;;  %vm440_vm2 = vcmask 130048   ;;  %s1862_s5 = smov [#allocation14]  }
  0x7f   :  { %1422 = vmatprep.subr.bf16.mxu1 %v1859_v0  ;;  %1438 = vmatprep.mubr.msk.bf16.mxu1 %vm1860_vm0, %v1859_v0  ;;  %v1565_v4 = vld [vmem:[#allocation8] sm:$0xff]   ;;  %v136_v5 = vpack.c.bf16 %v131_v3, %v131_v3  ;;  %v1568_v8 = vld [vmem:[#allocation8 + $0x18] sm:$0xff]   ;;  %v1570_v10 = vld [vmem:[#allocation8 + $0x28] sm:$0xff]   ;;  %s1246_s23 = sshll.u32 %s1862_s5, 4  ;;  %s1247_s23 = int_to_ptr.vmem [resolvable:$true] %s1246_s23 }
  0x80   :  { %1415 = vmatpush3.bf16.msra.mxu0 %v1563_v1  ;;  %1423 = vmatpush3.bf16.msra.mxu1 %v1565_v4  ;;  %v1569_v9 = vld [vmem:[#allocation8 + $0x20] sm:$0xff]   ;;  %v1571_v11 = vld [vmem:[#allocation8 + $0x30] sm:$0xff]   ;;  %v1572_v12 = vld [vmem:[#allocation8 + $0x38] sm:$0xff]   ;;  %p1821_p1 = scmp.lt.s32.totalorder %s1247_s23, %s1247_s23 }
  0x81   :  { %1416 = vmatprep.subr.bf16.mxu0 %v1859_v0  ;;  %1424 = vmatprep.subr.bf16.mxu1 %v1859_v0  ;;  %v1574_v13 = vld [vmem:[#allocation8 + $0x40] sm:$0xff]   ;;  %v1575_v14 = vld [vmem:[#allocation8 + $0x48] sm:$0xff]   ;;  %v1576_v15 = vld [vmem:[#allocation8 + $0x50] sm:$0xff]  }
  0x82   :  { %v1577_v16 = vld [vmem:[#allocation8 + $0x58] sm:$0xff]   ;;  %v1578_v17 = vld [vmem:[#allocation8 + $0x60] sm:$0xff]   ;;  %v1579_v18 = vld [vmem:[#allocation8 + $0x68] sm:$0xff]  }
  0x83   :  { %v1258_v19 = vld [vmem:[%s2145_s8] ss:$0 sm:$0xff]  ;;  %v425_v29 = vld [vmem:[#allocation5] sm:$0xff]  ;;  %v1581_v32 = vld [vmem:[#allocation8 + $0x78] sm:$0xff]  }
  0x84   :  { %1417 = vmatpush3.bf16.msra.mxu0 %v1564_v2  ;;  %1425 = vmatpush3.bf16.msra.mxu1 %v1566_v6  ;;  %v1573_v27 = vld [vmem:[%s2140_s3] sm:$0xff]   ;;  %v428_v30 = vpack.c.bf16 %v425_v29, %v425_v29  ;;  %v1582_v41 = vld [vmem:[#allocation10] sm:$0xff]   ;;  %v1583_v45 = vld [vmem:[#allocation10 + $0x8] sm:$0xff]  }
  0x85   :  { %1442 = vmatprep.subr.bf16.mxu0 %v1859_v0  ;;  %1426 = vmatprep.subr.bf16.mxu1 %v1859_v0  ;;  %v1580_v31 = vld [vmem:[#allocation8 + $0x70] sm:$0xff]   ;;  %v1585_v49 = vld [vmem:[#allocation10 + $0x18] sm:$0xff]   ;;  %v1586_v50 = vld [vmem:[#allocation10 + $0x20] sm:$0xff]  }
  0x86   :  { %v1262_v33 = vld [vmem:[%s2145_s8 + $0x1] ss:$0 sm:$0xff]  ;;  %v1280_v51 = vld [vmem:[%s2146_s9] ss:$0 sm:$0xff]  ;;  %v1587_v52 = vld [vmem:[#allocation10 + $0x28] sm:$0xff]  }
  0x87   :  { %1419 = vmatmul.mubr.msk.bf16.vlgmr.msra.gmra.mrb[0].mxu0 %vm154_vm1, %v136_v5  ;;  %v1584_v48 = vld [vmem:[#allocation10 + $0x10] sm:$0xff]   ;;  %v1589_v56 = vld [vmem:[#allocation10 + $0x38] sm:$0xff]  }
  0x88   :  { %1458 = vmatprep.mubr.msk.bf16.mxu0 %vm1860_vm0, %v1859_v0  ;;  %1427 = vmatpush3.bf16.msra.mxu1 %v1567_v7  ;;  %v1588_v54 = vld [vmem:[#allocation10 + $0x30] sm:$0xff]   ;;  %v1593_v61 = vld [vmem:[#allocation11 + $0x8] ss:$16 sps:$4 sm:$0xff]   ;;  %v1595_v62 = vld [vmem:[#allocation11 + $0xc] ss:$16 sps:$4 sm:$0xff]  }
  0x89   :  { %1428 = vmatprep.subr.bf16.mxu1 %v1859_v0  ;;  %1443 = vmatpush3.bf16.msra.mxu0 %v1574_v13  ;;  %v1590_v59 = vld [vmem:[#allocation11] ss:$16 sps:$4 sm:$0xff]   ;;  %v1592_v60 = vld [vmem:[#allocation11 + $0x4] ss:$16 sps:$4 sm:$0xff]   ;;  %v1601_v1 = vld [vmem:[#allocation11 + $0x2c] ss:$16 sps:$4 sm:$0xff]  }
  0x8a   :  { %1444 = vmatprep.subr.bf16.mxu0 %v1859_v0  ;;  %v1598_v63 = vld [vmem:[#allocation11 + $0x24] ss:$16 sps:$4 sm:$0xff]   ;;  %v1596_v2 = vld [vmem:[#allocation11 + $0x20] ss:$16 sps:$4 sm:$0xff]   ;;  %v1599_v3 = vld [vmem:[#allocation11 + $0x28] ss:$16 sps:$4 sm:$0xff]  }
  0x8b   :  { %v1604_v4 = vld [vmem:[#allocation11 + $0x44] ss:$16 sps:$4 sm:$0xff]   ;;  %v1607_v5 = vld [vmem:[#allocation11 + $0x4c] ss:$16 sps:$4 sm:$0xff]   ;;  %v1602_v6 = vld [vmem:[#allocation11 + $0x40] ss:$16 sps:$4 sm:$0xff]  }
  0x8c   :  { %1429 = vmatpush3.bf16.msra.mxu1 %v1568_v8  ;;  %v1605_v7 = vld [vmem:[#allocation11 + $0x48] ss:$16 sps:$4 sm:$0xff]   ;;  %v1610_v8 = vld [vmem:[#allocation11 + $0x64] ss:$16 sps:$4 sm:$0xff]   ;;  %v1619_v13 = vld [vmem:[#allocation11 + $0x8c] ss:$16 sps:$4 sm:$0xff]  }
  0x8d   :  { %1430 = vmatprep.subr.bf16.mxu1 %v1859_v0  ;;  %1445 = vmatpush3.bf16.msra.mxu0 %v1575_v14  ;;  %v1614_v14 = vld [vmem:[#allocation11 + $0x80] ss:$16 sps:$4 sm:$0xff]  }
  0x8e   :  { %1446 = vmatprep.subr.bf16.mxu0 %v1859_v0 }
  0x90   :  { %1431 = vmatpush3.bf16.msra.mxu1 %v1569_v9  ;;  %v1613_v9 = vld [vmem:[#allocation11 + $0x6c] ss:$16 sps:$4 sm:$0xff]  }
  0x91   :  { %1432 = vmatprep.subr.bf16.mxu1 %v1859_v0  ;;  %1447 = vmatpush3.bf16.msra.mxu0 %v1576_v15  ;;  %v1617_v15 = vld [vmem:[#allocation11 + $0x88] ss:$16 sps:$4 sm:$0xff]  }
  0x92   :  { %1448 = vmatprep.subr.bf16.mxu0 %v1859_v0 }
  0x94   :  { %1433 = vmatpush3.bf16.msra.mxu1 %v1570_v10  ;;  %v1608_v10 = vld [vmem:[#allocation11 + $0x60] ss:$16 sps:$4 sm:$0xff]  }
  0x95   :  { %1434 = vmatprep.subr.bf16.mxu1 %v1859_v0  ;;  %1449 = vmatpush3.bf16.msra.mxu0 %v1577_v16  ;;  %v1622_v16 = vld [vmem:[#allocation11 + $0xa4] ss:$16 sps:$4 sm:$0xff]  }
  0x96   :  { %1450 = vmatprep.subr.bf16.mxu0 %v1859_v0 }
  0x98   :  { %1435 = vmatpush3.bf16.msra.mxu1 %v1571_v11  ;;  %v1611_v11 = vld [vmem:[#allocation11 + $0x68] ss:$16 sps:$4 sm:$0xff]  }
  0x99   :  { %1436 = vmatprep.subr.bf16.mxu1 %v1859_v0  ;;  %1451 = vmatpush3.bf16.msra.mxu0 %v1578_v17  ;;  %v1625_v17 = vld [vmem:[#allocation11 + $0xac] ss:$16 sps:$4 sm:$0xff]  }
  0x9a   :  { %1452 = vmatprep.subr.bf16.mxu0 %v1859_v0 }
  0x9c   :  { %1437 = vmatpush3.bf16.msra.mxu1 %v1572_v12  ;;  %v1616_v12 = vld [vmem:[#allocation11 + $0x84] ss:$16 sps:$4 sm:$0xff]  }
  0x9d   :  { %1462 = vmatprep.subr.bf16.mxu1 %v1859_v0  ;;  %1453 = vmatpush3.bf16.msra.mxu0 %v1579_v18  ;;  %v1620_v18 = vld [vmem:[#allocation11 + $0xa0] ss:$16 sps:$4 sm:$0xff]  }
  0x9e   :  { %1454 = vmatprep.subr.bf16.mxu0 %v1859_v0 }
  0xa1   :  { %1455 = vmatpush3.bf16.msra.mxu0 %v1580_v31 }
  0xa2   :  { %1456 = vmatprep.subr.bf16.mxu0 %v1859_v0 }
  0xa5   :  { %1457 = vmatpush3.bf16.msra.mxu0 %v1581_v32 }
  0xa6   :  { %1468 = vmatprep.subr.bf16.mxu0 %v1859_v0 }
 0x15a   :  { %v192_v20 = vpop.f32.mrb[0].mxu0 }
 0x15b   :  { %v193_v21 = vadd.f32 %v1258_v19, %v192_v20  ;;  %v1420_v22 = vpop.f32.mrb[1].mxu0  ;;  %v1623_v19 = vld [vmem:[#allocation11 + $0xa8] ss:$16 sps:$4 sm:$0xff]   ;;  %v1628_v20 = vld [vmem:[#allocation11 + $0xc4] ss:$16 sps:$4 sm:$0xff]  }
 0x15c   :  { %v195_v23 = vpop.f32.mrb[2].mxu0  ;;  %v1626_v22 = vld [vmem:[#allocation11 + $0xc0] ss:$16 sps:$4 sm:$0xff]  }
 0x15d   :  { %v198_v24 = vmul.f32 0.2, %v193_v21  ;;  %v1421_v25 = vpop.f32.mrb[3].mxu0  ;;  %v1629_v23 = vld [vmem:[#allocation11 + $0xc8] ss:$16 sps:$4 sm:$0xff]  }
 0x15e   :  { %v1637_v25 = vld [vmem:[#allocation11 + $0xec] ss:$16 sps:$4 sm:$0xff]  }
 0x15f   :  { %v199_v26 = vmax.f32 %v193_v21, %v198_v24  ;;  %v1631_v21 = vld [vmem:[#allocation11 + $0xcc] ss:$16 sps:$4 sm:$0xff]   ;;  %v1634_v24 = vld [vmem:[#allocation11 + $0xe4] ss:$16 sps:$4 sm:$0xff]  }
 0x161   :  { %v216_v28 = vpack.c.bf16 %v199_v26, %v199_v26  ;;  %v1632_v26 = vld [vmem:[#allocation11 + $0xe0] ss:$16 sps:$4 sm:$0xff]  }
 0x163   :  { %1439 = vmatmul.mubr.bf16.vlgmr.msra.gmra.mrb[0].mxu1 %v216_v28  ;;  %v1861_v28 = vmov 0  }
 0x164   :  { %1463 = vmatpush3.bf16.msra.mxu1 %v1573_v27  ;;  %1464 = vmatprep.mubr.msk.bf16.mxu1 %vm1860_vm0, %v1859_v0  ;;  %v1635_v27 = vld [vmem:[#allocation11 + $0xe8] ss:$16 sps:$4 sm:$0xff]  }
 0x165   :  { %791 = vmatprep.subr.bf16.mxu1 %v1592_v60 }
 0x16b   :  { %1465 = vmatmul.mubr.msk.bf16.vlgmr.msra.gmra.mrb[4].mxu1 %vm440_vm2, %v428_v30 }
 0x16c   :  { %792 = vmatpush1.bf16.msra.mxu1 %v1590_v59  ;;  %823 = vmatprep.mubr.bf16.mxu1 %v1861_v28  ;;  %v1325_v59 = vld [vmem:[%s2145_s8 + $0x6] ss:$0 sm:$0xff] }
 0x16d   :  { %793 = vmatprep.subr.bf16.mxu1 %v1598_v63 }
 0x170   :  { %794 = vmatpush1.bf16.msra.mxu1 %v1596_v2 }
 0x171   :  { %795 = vmatprep.subr.bf16.mxu1 %v1604_v4 }
 0x174   :  { %796 = vmatpush1.bf16.msra.mxu1 %v1602_v6 }
 0x175   :  { %797 = vmatprep.subr.bf16.mxu1 %v1610_v8 }
 0x178   :  { %798 = vmatpush1.bf16.msra.mxu1 %v1608_v10 }
 0x179   :  { %799 = vmatprep.subr.bf16.mxu1 %v1616_v12  ;;  %v1652_v12 = vld [vmem:[#allocation8 + $0xf0] sm:$0xff]  }
 0x17c   :  { %800 = vmatpush1.bf16.msra.mxu1 %v1614_v14  ;;  %v1654_v14 = vld [vmem:[#allocation13] sm:$0xff]  }
 0x17d   :  { %801 = vmatprep.subr.bf16.mxu1 %v1622_v16  ;;  %v1656_v16 = vld [vmem:[#allocation13 + $0x10] sm:$0xff]  }
 0x180   :  { %802 = vmatpush1.bf16.msra.mxu1 %v1620_v18  ;;  %v1658_v18 = vld [vmem:[#allocation13 + $0x20] sm:$0xff]  }
 0x181   :  { %803 = vmatprep.subr.bf16.mxu1 %v1628_v20  ;;  %v1328_v20 = vld [vmem:[%s2145_s8 + $0x3] ss:$0 sm:$0xff] }
 0x184   :  { %804 = vmatpush1.bf16.msra.mxu1 %v1626_v22 }
 0x185   :  { %805 = vmatprep.subr.bf16.mxu1 %v1634_v24  ;;  %v1326_v24 = vld [vmem:[%s2145_s8 + $0x7] ss:$0 sm:$0xff] }
 0x188   :  { %806 = vmatpush1.bf16.msra.mxu1 %v1632_v26 }
 0x189   :  { %1488 = vmatprep.subr.bf16.mxu1 %v1859_v0 }
 0x236   :  { %v304_v34 = vpop.f32.mrb[0].mxu1 }
 0x237   :  { %v305_v35 = vadd.f32 %v1262_v33, %v304_v34  ;;  %v1440_v36 = vpop.f32.mrb[1].mxu1  ;;  %v1283_v33 = vld [vmem:[%s2146_s9 + $0x1] ss:$0 sm:$0xff] }
 0x238   :  { %v307_v37 = vpop.f32.mrb[2].mxu1 }
 0x239   :  { %v310_v38 = vmul.f32 0.2, %v305_v35  ;;  %v1441_v39 = vpop.f32.mrb[3].mxu1 }
 0x23b   :  { %v311_v40 = vmax.f32 %v305_v35, %v310_v38 }
 0x23d   :  { %v329_v42 = vpack.c.bf16 %v311_v40, %v311_v40 }
 0x23e   :  { %v478_v43 = vpop.f32.mrb[4].mxu1 }
 0x23f   :  { %1459 = vmatmul.mubr.bf16.vlgmr.msra.gmra.mrb[4].mxu0 %v329_v42  ;;  %v1466_v44 = vpop.f32.mrb[5].mxu1  ;;  %v479_v53 = vadd.f32 %v1280_v51, %v478_v43  ;;  %v1639_v43 = vld [vmem:[#allocation8 + $0x88] sm:$0xff]  }
 0x240   :  { %1469 = vmatpush3.bf16.msra.mxu0 %v1582_v41  ;;  %v481_v46 = vpop.f32.mrb[6].mxu1  ;;  %1484 = vmatprep.mubr.msk.bf16.mxu0 %vm1860_vm0, %v1859_v0  ;;  %v1638_v41 = vld [vmem:[#allocation8 + $0x80] sm:$0xff]   ;;  %v1640_v44 = vld [vmem:[#allocation8 + $0x90] sm:$0xff]   ;;  %v1647_v51 = vld [vmem:[#allocation8 + $0xc8] sm:$0xff]  }
 0x241   :  { %1470 = vmatprep.subr.bf16.mxu0 %v1859_v0  ;;  %v1467_v47 = vpop.f32.mrb[7].mxu1  ;;  %v484_v55 = vmul.f32 0.2, %v479_v53  ;;  %v1642_v46 = vld [vmem:[#allocation8 + $0xa0] sm:$0xff]  }
 0x242   :  { %v1643_v47 = vld [vmem:[#allocation8 + $0xa8] sm:$0xff]  }
 0x243   :  { %v485_v57 = vmax.f32 %v479_v53, %v484_v55  ;;  %v1649_v53 = vld [vmem:[#allocation8 + $0xd8] sm:$0xff]   ;;  %v1271_v55 = vld [vmem:[%s2145_s8 + $0x2] ss:$0 sm:$0xff] }
 0x244   :  { %1471 = vmatpush3.bf16.msra.mxu0 %v1583_v45  ;;  %v1641_v45 = vld [vmem:[#allocation8 + $0x98] sm:$0xff]  }
 0x245   :  { %1472 = vmatprep.subr.bf16.mxu0 %v1859_v0  ;;  %v502_v58 = vpack.c.bf16 %v485_v57, %v485_v57 }
 0x248   :  { %1473 = vmatpush3.bf16.msra.mxu0 %v1584_v48  ;;  %v1644_v48 = vld [vmem:[#allocation8 + $0xb0] sm:$0xff]  }
 0x249   :  { %1474 = vmatprep.subr.bf16.mxu0 %v1859_v0 }
 0x24c   :  { %1475 = vmatpush3.bf16.msra.mxu0 %v1585_v49  ;;  %v1645_v49 = vld [vmem:[#allocation8 + $0xb8] sm:$0xff]  }
 0x24d   :  { %1476 = vmatprep.subr.bf16.mxu0 %v1859_v0 }
 0x250   :  { %1477 = vmatpush3.bf16.msra.mxu0 %v1586_v50  ;;  %v1646_v50 = vld [vmem:[#allocation8 + $0xc0] sm:$0xff]  }
 0x251   :  { %1478 = vmatprep.subr.bf16.mxu0 %v1859_v0 }
 0x254   :  { %1479 = vmatpush3.bf16.msra.mxu0 %v1587_v52  ;;  %v1648_v52 = vld [vmem:[#allocation8 + $0xd0] sm:$0xff]  }
 0x255   :  { %1480 = vmatprep.subr.bf16.mxu0 %v1859_v0 }
 0x258   :  { %1481 = vmatpush3.bf16.msra.mxu0 %v1588_v54  ;;  %v1650_v54 = vld [vmem:[#allocation8 + $0xe0] sm:$0xff]  }
 0x259   :  { %1482 = vmatprep.subr.bf16.mxu0 %v1859_v0 }
 0x25c   :  { %1483 = vmatpush3.bf16.msra.mxu0 %v1589_v56 }
 0x25d   :  { %832 = vmatprep.subr.bf16.mxu0 %v1595_v62 }
 0x25f   :  { %1485 = vmatmul.mubr.bf16.vlgmr.msra.gmra.mrb[8].mxu0 %v502_v58  ;;  %v1324_v58 = vld [vmem:[%s2145_s8 + $0x5] ss:$0 sm:$0xff] }
 0x260   :  { %833 = vmatpush1.bf16.msra.mxu0 %v1593_v61  ;;  %864 = vmatprep.mubr.bf16.mxu0 %v1861_v28  ;;  %v1327_v28 = vld [vmem:[%s2145_s8 + $0x8] ss:$0 sm:$0xff] }
 0x261   :  { %834 = vmatprep.subr.bf16.mxu0 %v1601_v1 }
 0x264   :  { %835 = vmatpush1.bf16.msra.mxu0 %v1599_v3 }
 0x265   :  { %836 = vmatprep.subr.bf16.mxu0 %v1607_v5 }
 0x268   :  { %837 = vmatpush1.bf16.msra.mxu0 %v1605_v7 }
 0x269   :  { %838 = vmatprep.subr.bf16.mxu0 %v1613_v9 }
 0x26c   :  { %839 = vmatpush1.bf16.msra.mxu0 %v1611_v11  ;;  %v1651_v11 = vld [vmem:[#allocation8 + $0xe8] sm:$0xff]  }
 0x26d   :  { %840 = vmatprep.subr.bf16.mxu0 %v1619_v13  ;;  %v1653_v13 = vld [vmem:[#allocation8 + $0xf8] sm:$0xff]  }
 0x270   :  { %841 = vmatpush1.bf16.msra.mxu0 %v1617_v15  ;;  %v1655_v15 = vld [vmem:[#allocation13 + $0x8] sm:$0xff]  }
 0x271   :  { %842 = vmatprep.subr.bf16.mxu0 %v1625_v17  ;;  %v1657_v17 = vld [vmem:[#allocation13 + $0x18] sm:$0xff]  }
 0x274   :  { %843 = vmatpush1.bf16.msra.mxu0 %v1623_v19  ;;  %v1659_v19 = vld [vmem:[#allocation13 + $0x28] sm:$0xff]  }
 0x275   :  { %844 = vmatprep.subr.bf16.mxu0 %v1631_v21 }
 0x278   :  { %845 = vmatpush1.bf16.msra.mxu0 %v1629_v23 }
 0x279   :  { %846 = vmatprep.subr.bf16.mxu0 %v1637_v25 }
 0x27c   :  { %847 = vmatpush1.bf16.msra.mxu0 %v1635_v27 }
 0x27d   :  { %1508 = vmatprep.subr.bf16.mxu0 %v1859_v0 }
 0x312   :  { %v417_v29 = vpop.f32.mrb[4].mxu0 }
 0x313   :  { %v1460_v30 = vpop.f32.mrb[5].mxu0  ;;  %v418_v56 = vadd.f32 %v1271_v55, %v417_v29 }
 0x314   :  { %v420_v31 = vpop.f32.mrb[6].mxu0 }
 0x315   :  { %v1461_v32 = vpop.f32.mrb[7].mxu0  ;;  %v423_v57 = vmul.f32 0.2, %v418_v56 }
 0x317   :  { %v424_v62 = vmax.f32 %v418_v56, %v423_v57 }
 0x332   :  { %v590_v34 = vpop.f32.mrb[8].mxu0 }
 0x333   :  { %v591_v35 = vadd.f32 %v1283_v33, %v590_v34  ;;  %v1486_v36 = vpop.f32.mrb[9].mxu0 }
 0x334   :  { %v593_v37 = vpop.f32.mrb[10].mxu0  ;;  %v1661_v36 = vld [vmem:[#allocation13 + $0x38] sm:$0xff]  }
 0x335   :  { %v596_v38 = vmul.f32 0.2, %v591_v35  ;;  %v1487_v39 = vpop.f32.mrb[11].mxu0  ;;  %v1337_v37 = vld [vmem:[%s2145_s8 + $0x4] ss:$0 sm:$0xff]  ;;  %s1816_s8 = scalar_lea.vmem %s1247_s23, 128 }
 0x336   :  { %p1817_p0 = scmp.ne.s32.totalorder %s1247_s23, %s1816_s8  ;;  %p1822_p2 = scmp.lt.s32.totalorder %s1816_s8, %s1816_s8 }
 0x337   :  { %v597_v40 = vmax.f32 %v591_v35, %v596_v38  ;;  %v1660_v35 = vld [vmem:[#allocation13 + $0x30] sm:$0xff]  }
 0x338   :  { %p1823_p3 = por %p1822_p2, %p1821_p1 }
 0x339   :  { %v630_v42 = vpack.c.bf16 %v597_v40, %v597_v40 }
 0x33a   :  { %p1824_p4 = pnand %p1823_p3, %p1817_p0 }
 0x33b   :  { %824 = vmatmul.mubr.bf16.vlgmr.msra.gmra.mrb[8].mxu1 %v630_v42  ;;  %865 = vmatmul.mubr.bf16.vlgmr.msra.gmra.mrb[12].mxu0 %v630_v42 }
 0x33c   :  { %1489 = vmatpush3.bf16.msra.mxu1 %v1638_v41  ;;  %1504 = vmatprep.mubr.msk.bf16.mxu1 %vm1860_vm0, %v1859_v0 }
 0x33d   :  { %1490 = vmatprep.subr.bf16.mxu1 %v1859_v0  ;;  %1524 = vmatprep.mubr.msk.bf16.mxu0 %vm1860_vm0, %v1859_v0 }
 0x33e   :  { %1509 = vmatpush3.bf16.msra.mxu0 %v1646_v50 }
 0x33f   :  { %1510 = vmatprep.subr.bf16.mxu0 %v1859_v0 }
 0x340   :  { %1491 = vmatpush3.bf16.msra.mxu1 %v1639_v43 }
 0x341   :  { %1492 = vmatprep.subr.bf16.mxu1 %v1859_v0 }
 0x342   :  { %1511 = vmatpush3.bf16.msra.mxu0 %v1647_v51 }
 0x343   :  { %1512 = vmatprep.subr.bf16.mxu0 %v1859_v0 }
 0x344   :  { %1493 = vmatpush3.bf16.msra.mxu1 %v1640_v44 }
 0x345   :  { %1494 = vmatprep.subr.bf16.mxu1 %v1859_v0 }
 0x346   :  { %1513 = vmatpush3.bf16.msra.mxu0 %v1648_v52 }
 0x347   :  { %1514 = vmatprep.subr.bf16.mxu0 %v1859_v0 }
 0x348   :  { %1495 = vmatpush3.bf16.msra.mxu1 %v1641_v45 }
 0x349   :  { %1496 = vmatprep.subr.bf16.mxu1 %v1859_v0 }
 0x34a   :  { %1515 = vmatpush3.bf16.msra.mxu0 %v1649_v53 }
 0x34b   :  { %1516 = vmatprep.subr.bf16.mxu0 %v1859_v0 }
 0x34c   :  { %1497 = vmatpush3.bf16.msra.mxu1 %v1642_v46  ;;  %v1346_v46 = vld [vmem:[%s2147_s10] ss:$0 sm:$0xff] }
 0x34d   :  { %1498 = vmatprep.subr.bf16.mxu1 %v1859_v0 }
 0x34e   :  { %1517 = vmatpush3.bf16.msra.mxu0 %v1650_v54 }
 0x34f   :  { %1518 = vmatprep.subr.bf16.mxu0 %v1859_v0 }
 0x350   :  { %1499 = vmatpush3.bf16.msra.mxu1 %v1643_v47 }
 0x351   :  { %1500 = vmatprep.subr.bf16.mxu1 %v1859_v0 }
 0x352   :  { %1519 = vmatpush3.bf16.msra.mxu0 %v1651_v11 }
 0x353   :  { %1520 = vmatprep.subr.bf16.mxu0 %v1859_v0 }
 0x354   :  { %1501 = vmatpush3.bf16.msra.mxu1 %v1644_v48 }
 0x355   :  { %1502 = vmatprep.subr.bf16.mxu1 %v1859_v0 }
 0x356   :  { %1521 = vmatpush3.bf16.msra.mxu0 %v1652_v12 }
 0x357   :  { %1522 = vmatprep.subr.bf16.mxu0 %v1859_v0 }
 0x358   :  { %1503 = vmatpush3.bf16.msra.mxu1 %v1645_v49 }
 0x359   :  { %1528 = vmatprep.subr.bf16.mxu1 %v1859_v0 }
 0x35a   :  { %1523 = vmatpush3.bf16.msra.mxu0 %v1653_v13 }
 0x40e   :  { %v825_v60 = vpop.f32.mrb[8].mxu1  ;;  %v866_v61 = vpop.f32.mrb[12].mxu0 }
 0x40f   :  { %v878_v63 = vadd.f32 %v1324_v58, %v825_v60  ;;  %v827_v1 = vpop.f32.mrb[9].mxu1  ;;  %v868_v2 = vpop.f32.mrb[13].mxu0  ;;  %v890_v29 = vadd.f32 %v1326_v24, %v866_v61 }
 0x410   :  { %v884_v3 = vadd.f32 %v1325_v59, %v827_v1  ;;  %v829_v4 = vpop.f32.mrb[10].mxu1  ;;  %v870_v5 = vpop.f32.mrb[14].mxu0  ;;  %v896_v31 = vadd.f32 %v1327_v28, %v868_v2 }
 0x411   :  { %v897_v6 = vmul.f32 %v878_v63, %v424_v62  ;;  %v830_v7 = vpop.f32.mrb[11].mxu1  ;;  %v871_v8 = vpop.f32.mrb[15].mxu0 }
 0x413   :  { %v898_v9 = vadd.f32 %v897_v6, %v884_v3 }
 0x415   :  { %v916_v10 = vpack.c.bf16 %v898_v9, %v898_v9 }
 0x417   :  { %1505 = vmatmul.mubr.bf16.vlgmr.msra.gmra.mrb[12].mxu1 %v916_v10 }
 0x418   :  { %1544 = vmatprep.mubr.msk.bf16.mxu1 %vm1860_vm0, %v1859_v0  ;;  %1529 = vmatpush3.bf16.msra.mxu1 %v1654_v14 }
 0x419   :  { %1530 = vmatprep.subr.bf16.mxu1 %v1859_v0 }
 0x41c   :  { %1531 = vmatpush3.bf16.msra.mxu1 %v1655_v15 }
 0x41d   :  { %1532 = vmatprep.subr.bf16.mxu1 %v1859_v0 }
 0x420   :  { %1533 = vmatpush3.bf16.msra.mxu1 %v1656_v16 }
 0x421   :  { %1534 = vmatprep.subr.bf16.mxu1 %v1859_v0 }
 0x424   :  { %1535 = vmatpush3.bf16.msra.mxu1 %v1657_v17 }
 0x425   :  { %1536 = vmatprep.subr.bf16.mxu1 %v1859_v0 }
 0x428   :  { %1537 = vmatpush3.bf16.msra.mxu1 %v1658_v18 }
 0x429   :  { %1538 = vmatprep.subr.bf16.mxu1 %v1859_v0 }
 0x42c   :  { %1539 = vmatpush3.bf16.msra.mxu1 %v1659_v19 }
 0x42d   :  { %1540 = vmatprep.subr.bf16.mxu1 %v1859_v0 }
 0x430   :  { %1541 = vmatpush3.bf16.msra.mxu1 %v1660_v35 }
 0x431   :  { %1542 = vmatprep.subr.bf16.mxu1 %v1859_v0 }
 0x434   :  { %1543 = vmatpush3.bf16.msra.mxu1 %v1661_v36 }
 0x4ea   :  { %v1004_v21 = vpop.f32.mrb[12].mxu1 }
 0x4eb   :  { %v1005_v22 = vadd.f32 %v1328_v20, %v1004_v21  ;;  %v1506_v23 = vpop.f32.mrb[13].mxu1 }
 0x4ec   :  { %v1007_v25 = vpop.f32.mrb[14].mxu1 }
 0x4ed   :  { %v1010_v26 = vmul.f32 0.2, %v1005_v22  ;;  %v1507_v27 = vpop.f32.mrb[15].mxu1 }
 0x4ef   :  { %v1011_v30 = vmax.f32 %v1005_v22, %v1010_v26 }
 0x4f1   :  { %v1012_v32 = vmul.f32 %v1011_v30, %v890_v29 }
 0x4f3   :  { %v1013_v33 = vadd.f32 %v1012_v32, %v896_v31 }
 0x4f5   :  { %v1031_v34 = vpack.c.bf16 %v1013_v33, %v1013_v33 }
 0x4f7   :  { %1525 = vmatmul.mubr.bf16.vlgmr.msra.gmra.mrb[16].mxu0 %v1031_v34 }
 0x5ca   :  { %v1119_v38 = vpop.f32.mrb[16].mxu0 }
 0x5cb   :  { %v1120_v39 = vadd.f32 %v1337_v37, %v1119_v38  ;;  %v1526_v40 = vpop.f32.mrb[17].mxu0 }
 0x5cc   :  { %v1122_v41 = vpop.f32.mrb[18].mxu0 }
 0x5cd   :  { %v1125_v42 = vmul.f32 0.2, %v1120_v39  ;;  %v1527_v43 = vpop.f32.mrb[19].mxu0 }
 0x5cf   :  { %v1126_v44 = vmax.f32 %v1120_v39, %v1125_v42 }
 0x5d1   :  { %v1143_v45 = vpack.c.bf16 %v1126_v44, %v1126_v44 }
 0x5d3   :  { %1545 = vmatmul.mubr.bf16.vlgmr.msra.gmra.mrb[16].mxu1 %v1143_v45 }
 0x6a6   :  { %v1233_v0 = vpop.f32.mrb[16].mxu1 }
 0x6a7   :  { %v1234_v47 = vadd.f32 %v1346_v46, %v1233_v0  ;;  %v1546_v48 = vpop.f32.mrb[17].mxu1 }
 0x6a8   :  { %v1236_v49 = vpop.f32.mrb[18].mxu1 }
 0x6a9   :  { %1239 = vst [vmem:[#allocation14] sm:$0xff] %v1234_v47  ;;  %v1547_v50 = vpop.f32.mrb[19].mxu1 }
 0x6aa   :  { %1827 = shalt.err (!%p1824_p4)
}
 0x6ab   :  { %s1828_s10 = scalar_lea.hbm %s2148_s11, 128 }
 0x6ac   :  { %p1829_p5 = scmp.ne.s32.totalorder %s2148_s11, %s1828_s10  ;;  %p1832_p6 = scmp.lt.u32.totalorder %s1828_s10, %s2148_s11 }
 0x6ae   :  { %p1834_p7 = pnand %p1832_p6, %p1829_p5 }
 0x6b0   :  { %1837 = shalt.err (!%p1834_p7)
}
 0x6b1   :  { %1249 = dma.vmem_to_hbm [thread:$0]  %s1247_s23, 128, %s2148_s11, [#allocation4]  }
 0x6b2   :  { %1846 = dma.done.wait [#allocation4], 128  }
 0x6b3   :  { %1847 = vsyncadd [#allocation4], 4294967168 }
 0x6b4   :  { %1253 = vsyncpa [#allocation3], 1 }
 0x6b5   :  { %1254 = vsyncpa [#allocation6], 1 }
 0x6b6   :  { %1255 = vsyncpa [#allocation9], 1 }
 0x6b7   :  { %1256 = vsyncpa [#allocation12], 1 }
 0x6b8   :  { %1257 = vsyncpa [#allocation4], 1 }

</bundles_post_ra>
